<compile_context>
chip_gen: v7x
topology: tpu7x:2x2x1
jax: 0.10.0
libtpu: 0.0.40
codegen_flags: <defaults>
</compile_context>

<pallas_src>
import functools

import jax
import jax.numpy as jnp
from jax.experimental import pallas as pl
from jax.experimental.pallas import tpu as pltpu


def _round_up(x: int, m: int) -> int:
    return ((x + m - 1) // m) * m


def _pick_col_tile(n_pad: int) -> int:
    """Column tile tn (multiple of 128 dividing n_pad)."""
    if n_pad <= 512:
        return n_pad
    for cand in (512, 384, 256, 128):
        if n_pad % cand == 0:
            return cand
    return 128  # unreachable: n_pad is always a multiple of 128


def _emd_kernel(yt_ref, yp_ref, out_ref, tri_ref, carry_ref, acc_ref, *,
                tn, n_orig, n_pad, matmul_dtype):
    # grid = (row_tiles [parallel], col_tiles [arbitrary / serial carry])
    j = pl.program_id(1)

    @pl.when(j == 0)
    def _():
        carry_ref[...] = jnp.zeros_like(carry_ref)
        acc_ref[...] = jnp.zeros_like(acc_ref)
        # j-independent (tn, tn) upper-triangular ones matrix: built once per
        # row tile, stays resident in VMEM for the whole column loop.
        row = jax.lax.broadcasted_iota(jnp.int32, (tn, tn), 0)
        col = jax.lax.broadcasted_iota(jnp.int32, (tn, tn), 1)
        tri_ref[...] = (row <= col).astype(matmul_dtype)

    d = yt_ref[...] - yp_ref[...]                               # (tb, tn) f32

    # Panel-local cumsum on the MXU, then add the running per-row carry from
    # all previous panels -> global cumsum for this panel's columns.
    c = jnp.dot(d.astype(matmul_dtype), tri_ref[...],
                preferred_element_type=jnp.float32)             # (tb, tn) f32
    c = c + carry_ref[...]                                      # (tb,1) bcast

    c2 = c * c
    if n_pad != n_orig:
        # Padded columns carry the full row sum (NOT zero) -> mask them out.
        col_idx = jax.lax.broadcasted_iota(jnp.int32, (1, tn), 1) + j * tn
        c2 = jnp.where(col_idx < n_orig, c2, 0.0)

    # Lane-shaped partial accumulation (no full cross-lane reduce per step).
    acc_ref[...] += jnp.sum(c2, axis=0, keepdims=True)          # (1, tn)
    # Advance the carry with this panel's full-precision row sums
    # (padded d columns are zero, so this stays correct on the last panel).
    carry_ref[...] += jnp.sum(d, axis=-1, keepdims=True)        # (tb, 1)

    @pl.when(j == pl.num_programs(1) - 1)
    def _():
        out_ref[...] = acc_ref[...].reshape(1, 1, tn)


def emd_loss(y_true: jax.Array, y_pred: jax.Array, *,
             matmul_dtype=jnp.float32) -> jax.Array:
    """Earth Mover distance loss, matching EMDLoss.forward."""
    assert y_true.shape == y_pred.shape
    n = y_true.shape[-1]
    yt = jnp.asarray(y_true, jnp.float32).reshape(-1, n)
    yp = jnp.asarray(y_pred, jnp.float32).reshape(-1, n)
    b = yt.shape[0]

    # Column padding to a lane-dense multiple of 128; the kernel masks the
    # padded cumsum columns before squaring.
    n_pad = _round_up(n, 128)
    tn = _pick_col_tile(n_pad)
    col_tiles = n_pad // tn

    # Batch tile: big enough for the MXU, but guarantee >= 2 row tiles when
    # the batch allows so v7x's second TensorCore has work on the "parallel"
    # axis (neutral on single-TC v5e/v6e).
    b_r8 = _round_up(b, 8)
    tb = min(256, b_r8)
    if b_r8 // tb < 2 and b_r8 >= 16:
        tb = _round_up((b_r8 + 1) // 2, 8)
    b_pad = _round_up(b, tb)
    row_tiles = b_pad // tb

    pad_rows = b_pad - b
    pad_cols = n_pad - n
    if pad_rows or pad_cols:
        # Zero-padded rows give d = 0 -> zero contribution to the loss.
        yt = jnp.pad(yt, ((0, pad_rows), (0, pad_cols)))
        yp = jnp.pad(yp, ((0, pad_rows), (0, pad_cols)))

    itemsize = jnp.dtype(matmul_dtype).itemsize
    # VMEM estimate: double-buffered (tb, tn) f32 input tiles (x2 arrays),
    # resident tri scratch, carry/acc scratch, output block, f32 temporaries.
    vmem_est = (2 * 2 * 4 * tb * tn
                + itemsize * tn * tn
                + 4 * (tb + tn)
                + 2 * 4 * tn
                + 6 * 4 * tb * tn)
    vmem_limit = int(min(max(2 * vmem_est, 16 << 20), 48 << 20))

    cost = pl.CostEstimate(
        flops=2 * b_pad * n_pad * tn + 4 * b_pad * n_pad,
        transcendentals=0,
        bytes_accessed=2 * 4 * b_pad * n_pad + 4 * row_tiles * tn,
    )

    partials = pl.pallas_call(
        functools.partial(_emd_kernel, tn=tn, n_orig=n, n_pad=n_pad,
                          matmul_dtype=matmul_dtype),
        out_shape=jax.ShapeDtypeStruct((row_tiles, 1, tn), jnp.float32),
        grid_spec=pltpu.PrefetchScalarGridSpec(
            num_scalar_prefetch=0,
            grid=(row_tiles, col_tiles),
            in_specs=[
                pl.BlockSpec((tb, tn), lambda i, j: (i, j)),   # y_true panel
                pl.BlockSpec((tb, tn), lambda i, j: (i, j)),   # y_pred panel
            ],
            out_specs=pl.BlockSpec((1, 1, tn), lambda i, j: (i, 0, 0)),
            scratch_shapes=[
                pltpu.VMEM((tn, tn), matmul_dtype),   # upper-triangular ones
                pltpu.VMEM((tb, 1), jnp.float32),     # per-row running carry
                pltpu.VMEM((1, tn), jnp.float32),     # lane-shaped partial
            ],
        ),
        compiler_params=pltpu.CompilerParams(
            dimension_semantics=("parallel", "arbitrary"),
            vmem_limit_bytes=vmem_limit,
        ),
        cost_estimate=cost,
    )(yt, yp)

    # Final tiny reduction + the 1/N "mean over last dim" scale, done once.
    return jnp.sum(partials) * (1.0 / n)


def _reference(y_true, y_pred):
    return jnp.sum(
        jnp.mean(
            jnp.square(jnp.cumsum(y_true, axis=-1) - jnp.cumsum(y_pred, axis=-1)),
            axis=-1,
        )
    )


if __name__ == "__main__":
    key = jax.random.PRNGKey(0)
    k1, k2, k3, k4, k5, k6 = jax.random.split(key, 6)

    # 1) Lane-aligned spectra batch (f32, bit-tight vs reference).
    y_true = jax.random.uniform(k1, (16, 128), dtype=jnp.float32)
    y_pred = jax.random.uniform(k2, (16, 128), dtype=jnp.float32)
    loss = emd_loss(y_true, y_pred)
    jax.block_until_ready(loss)
    ref = _reference(y_true, y_pred)
    assert jnp.allclose(loss, ref, rtol=1e-5, atol=1e-5), (loss, ref)

    # 2) Odd shapes: batch padding (20 rows) + column padding (200 -> 256),
    #    exercising the padded-column mask.
    y_true2 = jax.random.uniform(k3, (20, 200), dtype=jnp.float32)
    y_pred2 = jax.random.uniform(k4, (20, 200), dtype=jnp.float32)
    loss2 = emd_loss(y_true2, y_pred2)
    jax.block_until_ready(loss2)
    ref2 = _reference(y_true2, y_pred2)
    assert jnp.allclose(loss2, ref2, rtol=1e-5, atol=1e-5), (loss2, ref2)

    # 3) Multi-panel case (N = 1024 -> two 512-wide panels): exercises the
    #    blocked prefix-sum running carry.
    y_true3 = jax.random.uniform(k5, (8, 1024), dtype=jnp.float32)
    y_pred3 = jax.random.uniform(k6, (8, 1024), dtype=jnp.float32)
    loss3 = emd_loss(y_true3, y_pred3)
    jax.block_until_ready(loss3)
    ref3 = _reference(y_true3, y_pred3)
    assert jnp.allclose(loss3, ref3, rtol=1e-4, atol=1e-4), (loss3, ref3)

    # 4) Opt-in bf16 MXU operands (fast path on v6e/v7x); loose tolerance.
    loss_bf16 = emd_loss(y_true, y_pred, matmul_dtype=jnp.bfloat16)
    jax.block_until_ready(loss_bf16)
    assert jnp.allclose(loss_bf16, ref, rtol=5e-2, atol=5e-2), (loss_bf16, ref)

    print("KERNEL_OK")
</pallas_src>

<mosaic_0001>
module attributes {stable_mosaic.version = 11 : i64} {
  func.func @_emd_kernel(%arg0: i32, %arg1: i32, %arg2: memref<8x128xf32, #tpu.memory_space<vmem>>, %arg3: memref<8x128xf32, #tpu.memory_space<vmem>>, %arg4: memref<1x1x128xf32, #tpu.memory_space<vmem>>, %arg5: memref<128x128xf32, #tpu.memory_space<vmem>>, %arg6: memref<8x1xf32, #tpu.memory_space<vmem>>, %arg7: memref<1x128xf32, #tpu.memory_space<vmem>>) attributes {dimension_semantics = [#tpu.dimension_semantics<parallel>, #tpu.dimension_semantics<arbitrary>], iteration_bounds = array<i64: 2, 1>, scalar_prefetch = 0 : i64, scratch_operands = 3 : i64, tpu.core_type = #tpu.core_type<tc>, window_params = [{transform_indices = @transform_0, window_bounds = array<i64: 8, 128>}, {transform_indices = @transform_1, window_bounds = array<i64: 8, 128>}, {transform_indices = @transform_2, window_bounds = array<i64: 1, 1, 128>}]} {
    %c0_i32 = arith.constant 0 : i32
    %0 = arith.cmpi eq, %arg1, %c0_i32 : i32
    %1 = arith.extui %0 : i1 to i32
    %c0_i32_0 = arith.constant 0 : i32
    %2 = arith.cmpi ne, %1, %c0_i32_0 : i32
    scf.if %2 {
      %cst_20 = arith.constant 0.000000e+00 : f32
      %25 = vector.broadcast %cst_20 : f32 to vector<8x1xf32>
      %c0_21 = arith.constant 0 : index
      %c0_22 = arith.constant 0 : index
      %26 = vector.load %arg6[%c0_21, %c0_22] : memref<8x1xf32, #tpu.memory_space<vmem>>, vector<8x1xf32>
      tpu.vector_store %arg6[%c0_21, %c0_22], %25 {strides = array<i32>} : memref<8x1xf32, #tpu.memory_space<vmem>>, vector<8x1xf32>,
      %cst_23 = arith.constant 0.000000e+00 : f32
      %27 = vector.broadcast %cst_23 : f32 to vector<1x128xf32>
      %c0_24 = arith.constant 0 : index
      %c0_25 = arith.constant 0 : index
      %28 = vector.load %arg7[%c0_24, %c0_25] : memref<1x128xf32, #tpu.memory_space<vmem>>, vector<1x128xf32>
      tpu.vector_store %arg7[%c0_24, %c0_25], %27 {strides = array<i32>} : memref<1x128xf32, #tpu.memory_space<vmem>>, vector<1x128xf32>,
      %29 = tpu.iota {dimensions = array<i32: 0>} : vector<128x128xi32>
      %30 = tpu.iota {dimensions = array<i32: 1>} : vector<128x128xi32>
      %31 = arith.cmpi sle, %29, %30 : vector<128x128xi32>
      %32 = arith.extui %31 : vector<128x128xi1> to vector<128x128xi32>
      %33 = arith.sitofp %32 : vector<128x128xi32> to vector<128x128xf32>
      %c0_26 = arith.constant 0 : index
      %c0_27 = arith.constant 0 : index
      %34 = vector.load %arg5[%c0_26, %c0_27] : memref<128x128xf32, #tpu.memory_space<vmem>>, vector<128x128xf32>
      tpu.vector_store %arg5[%c0_26, %c0_27], %33 {strides = array<i32>} : memref<128x128xf32, #tpu.memory_space<vmem>>, vector<128x128xf32>,
    } else {
    }
    %c0 = arith.constant 0 : index
    %c0_1 = arith.constant 0 : index
    %3 = vector.load %arg2[%c0, %c0_1] : memref<8x128xf32, #tpu.memory_space<vmem>>, vector<8x128xf32>
    %c0_2 = arith.constant 0 : index
    %c0_3 = arith.constant 0 : index
    %4 = vector.load %arg3[%c0_2, %c0_3] : memref<8x128xf32, #tpu.memory_space<vmem>>, vector<8x128xf32>
    %5 = arith.subf %3, %4 : vector<8x128xf32>
    %c0_4 = arith.constant 0 : index
    %c0_5 = arith.constant 0 : index
    %6 = vector.load %arg5[%c0_4, %c0_5] : memref<128x128xf32, #tpu.memory_space<vmem>>, vector<128x128xf32>
    %cst = arith.constant dense<0.000000e+00> : vector<8x128xf32>
    %7 = tpu.matmul %5, %6, %cst {dimension_numbers = #tpu.dot_dimension_numbers<[1], [0], [0], [1], [0, 0, 1, 1], [], []>} : vector<8x128xf32>, vector<128x128xf32>, vector<8x128xf32> -> vector<8x128xf32>
    %c0_6 = arith.constant 0 : index
    %c0_7 = arith.constant 0 : index
    %8 = vector.load %arg6[%c0_6, %c0_7] : memref<8x1xf32, #tpu.memory_space<vmem>>, vector<8x1xf32>
    %9 = vector.broadcast %8 : vector<8x1xf32> to vector<8x128xf32>
    %10 = arith.addf %7, %9 : vector<8x128xf32>
    %11 = arith.mulf %10, %10 : vector<8x128xf32>
    %c0_8 = arith.constant 0 : index
    %c0_9 = arith.constant 0 : index
    %12 = vector.load %arg7[%c0_8, %c0_9] : memref<1x128xf32, #tpu.memory_space<vmem>>, vector<1x128xf32>
    %cst_10 = arith.constant dense<0.000000e+00> : vector<128xf32>
    %13 = vector.multi_reduction <add>, %11, %cst_10 [0] : vector<8x128xf32> to vector<128xf32>
    %14 = vector.shape_cast %13 : vector<128xf32> to vector<1x128xf32>
    %15 = arith.addf %12, %14 : vector<1x128xf32>
    %c0_11 = arith.constant 0 : index
    %c0_12 = arith.constant 0 : index
    %16 = vector.load %arg7[%c0_11, %c0_12] : memref<1x128xf32, #tpu.memory_space<vmem>>, vector<1x128xf32>
    tpu.vector_store %arg7[%c0_11, %c0_12], %15 {strides = array<i32>} : memref<1x128xf32, #tpu.memory_space<vmem>>, vector<1x128xf32>,
    %c0_13 = arith.constant 0 : index
    %c0_14 = arith.constant 0 : index
    %17 = vector.load %arg6[%c0_13, %c0_14] : memref<8x1xf32, #tpu.memory_space<vmem>>, vector<8x1xf32>
    %cst_15 = arith.constant dense<0.000000e+00> : vector<8xf32>
    %18 = vector.multi_reduction <add>, %5, %cst_15 [1] : vector<8x128xf32> to vector<8xf32>
    %19 = vector.shape_cast %18 : vector<8xf32> to vector<8x1xf32>
    %20 = arith.addf %17, %19 : vector<8x1xf32>
    %c0_16 = arith.constant 0 : index
    %c0_17 = arith.constant 0 : index
    %21 = vector.load %arg6[%c0_16, %c0_17] : memref<8x1xf32, #tpu.memory_space<vmem>>, vector<8x1xf32>
    tpu.vector_store %arg6[%c0_16, %c0_17], %20 {strides = array<i32>} : memref<8x1xf32, #tpu.memory_space<vmem>>, vector<8x1xf32>,
    %c0_i32_18 = arith.constant 0 : i32
    %22 = arith.cmpi eq, %arg1, %c0_i32_18 : i32
    %23 = arith.extui %22 : i1 to i32
    %c0_i32_19 = arith.constant 0 : i32
    %24 = arith.cmpi ne, %23, %c0_i32_19 : i32
    scf.if %24 {
      %c0_20 = arith.constant 0 : index
      %c0_21 = arith.constant 0 : index
      %25 = vector.load %arg7[%c0_20, %c0_21] : memref<1x128xf32, #tpu.memory_space<vmem>>, vector<1x128xf32>
      %26 = vector.shape_cast %25 : vector<1x128xf32> to vector<1x1x128xf32>
      %c0_22 = arith.constant 0 : index
      %c0_23 = arith.constant 0 : index
      %c0_24 = arith.constant 0 : index
      %27 = vector.load %arg4[%c0_22, %c0_23, %c0_24] : memref<1x1x128xf32, #tpu.memory_space<vmem>>, vector<1x1x128xf32>
      tpu.vector_store %arg4[%c0_22, %c0_23, %c0_24], %26 {strides = array<i32>} : memref<1x1x128xf32, #tpu.memory_space<vmem>>, vector<1x1x128xf32>,
    } else {
    }
    return
  }
  func.func @transform_0(%arg0: i32, %arg1: i32) -> (i32, i32) {
    %c0_i32 = arith.constant 0 : i32
    return %arg0, %arg1 : i32, i32
  }
  func.func @transform_1(%arg0: i32, %arg1: i32) -> (i32, i32) {
    %c0_i32 = arith.constant 0 : i32
    return %arg0, %arg1 : i32, i32
  }
  func.func @transform_2(%arg0: i32, %arg1: i32) -> (i32, i32, i32) {
    %c0_i32 = arith.constant 0 : i32
    %c0_i32_0 = arith.constant 0 : i32
    %c0_i32_1 = arith.constant 0 : i32
    return %arg0, %c0_i32, %c0_i32_0 : i32, i32, i32
  }
}

</mosaic_0001>

<bundles_post_ra>
// kernel: tpu_custom_call.1
= control target key start
LH: loop header
LB: loop body
LE: loop exit
PB: predicated region body
PF: predicated region fallthrough
CT: control target
= control target key end

     0   :  { %7 = vsyncpa [#allocation6], 0  ;;  %s1152_s0 = inlined_call_operand.hbm [shape: f32[16,128], index: 0, kind: input, shape index: {}]   ;;  %s1153_s1 = inlined_call_operand.hbm [shape: f32[16,128], index: 1, kind: input, shape index: {}]   ;;  %s1154_s2 = inlined_call_operand.hbm [shape: f32[2,1,128], index: 2, kind: output, shape index: {}]  }
   0x1   :  { %9 = vsyncpa [#allocation6 + $0x1], 0 }
   0x2   :  { %10 = vsyncpa [#allocation9], 0 }
   0x3   :  { %12 = vsyncpa [#allocation9 + $0x1], 0 }
   0x4   :  { %13 = vsyncpa [#allocation7], 0 }
   0x5   :  { %15 = vsyncpa [#allocation7 + $0x1], 0  ;;  %s897_s9 = smov 0   ;;  %s899_s10 = smov 0  }
   0x6   :  { %s901_s11 = smov 0   ;;  %s903_s12 = smov 0  }
   0x7   :  { %s905_s13 = smov 0   ;;  %s907_s14 = smov 0  }
   0x8 LB: > { %s531_s15 = sadd.s32 4294967295, %s872_s14   ;;  %s532_s16 = sadd.s32 4294967294, %s872_s14   ;;  %s872_s14 = sphi %s907_s14, %s21_s14   ;;  %s868_s13 = sphi %s905_s13, %s1174_s13   ;;  %s864_s12 = sphi %s903_s12, %s1173_s12   ;;  %s860_s11 = sphi %s901_s11, %s1172_s11   ;;  %s856_s10 = sphi %s899_s10, %s1171_s10   ;;  %s852_s9 = sphi %s897_s9, %s1170_s9  }
   0x9   : > { %s33_s17 = sadd.s32 1, %s868_s13  ;;  %s42_s18 = sadd.s32 1, %s860_s11 }
   0xa   : > { %p35_p0 = scmp.ge.s32.totalorder %s33_s17, 2  ;;  %p49_p1 = scmp.ne.s32.totalorder %s860_s11, %s856_s10 }
   0xb   : > { %p50_p2 = scmp.eq.s32.totalorder %s872_s14, 0  ;;  %p55_p3 = scmp.ne.s32.totalorder %s856_s10, %s852_s9 }
   0xc   : > { %s1176_s17 = smov (%p35_p0, %s33_s17), 0  ;;  %p56_p5 = scmp.eq.s32.totalorder %s531_s15, 0 }
   0xd   : > { %p938_p4 = por %p50_p2, %p49_p1  ;;  %s37_s20 = ssub.s32 %s868_s13, %s1176_s17 }
   0xe   : > { %p107_p6 = scmp.eq.s32.totalorder %s531_s15, 1  ;;  %p40_p7 = scmp.eq.s32.totalorder %s37_s20, 0 }
   0xf   : > { %p944_p8 = por %p56_p5, %p55_p3  ;;  %p113_p10 = scmp.eq.s32.totalorder %s532_s16, 1 }
  0x10   : > { %p948_p9 = por %p107_p6, %p49_p1  ;;  %p670_p13 = scmp.lt.s32.totalorder %s872_s14, 2 }
  0x11   : > { %s1158_s21 = scalar_select %p944_p8, 1, 0 }
  0x12   : > { %s1159_s22 = scalar_select %p948_p9, 1, 0 }
  0x13   : > { %s953_s23 = scalar_select %p40_p7, %s860_s11, %s42_s18  }
  0x14   : > { %p955_p11 = por %p113_p10, %p55_p3  ;;  %s962_s25 = sand.u32 1, %s860_s11  }
  0x15   : > { %s535_s26 = sshll.u32 %s962_s25, 3  ;;  %s536_s27 = sshll.u32 %s868_s13, 7 }
  0x16   : > { %s1160_s24 = scalar_select %p955_p11, 1, 0 }
  0x17   : > { %s971_s30 = scalar_lea.hbm %s1152_s0, %s536_s27  ;;  %s137_s3 = scalar_lea.vmem [#allocation5], %s535_s26 }
  0x18   : > { %s145_s4 = sshll.u32 %s137_s3, 4  ;;  %p979_p0 = pnand %p670_p13, %p938_p4  ;;  %s975_s4 = int_to_ptr.vmem [resolvable:$true] %s145_s4 }
  0x19   : > { %s134_s6 = scalar_lea.sflag [#allocation6], %s962_s25  ;;  %s726_s7 = scalar_lea.hbm %s971_s30, 128 }
  0x1a   : > { %p727_p3 = scmp.ne.s32.totalorder %s971_s30, %s726_s7  ;;  %p728_p5 = pneg %p979_p0 }
  0x1b   : > { %s731_s16 = scalar_lea.hbm %s1152_s0, 256  ;;  %p732_p4 = scmp.lt.u32.totalorder %s971_s30, %s1152_s0 }
  0x1c   : > { %p729_p6 = pnand %p728_p5, %p727_p3  ;;  %p733_p10 = scmp.lt.u32.totalorder %s731_s16, %s726_s7 }
  0x1d   : > { %p735_p12 = scmp.lt.u32.totalorder %s726_s7, %s971_s30 }
  0x1e   : > { %p730_p7 = pneg %p729_p6  ;;  %p734_p13 = por %p733_p10, %p732_p4 }
  0x20   : > { %p736_p1 = por %p735_p12, %p734_p13 }
  0x22   : > { %p737_p2 = pnand %p736_p1, %p730_p7 }
  0x24   : > { %740 = shalt.err (!%p737_p2)
}
  0x25   : > { %s741_s20 = scalar_lea.vmem %s975_s4, 128  ;;  %s874_s28 = smov [#allocation5]  }
  0x26   : > { %p742_p3 = scmp.ne.s32.totalorder %s975_s4, %s741_s20  ;;  %s746_s29 = sshll.u32 %s874_s28, 4  ;;  %s747_s29 = int_to_ptr.vmem [resolvable:$false] %s746_s29 }
  0x27   : > { %s748_s3 = scalar_lea.vmem %s747_s29, 256  ;;  %p749_p9 = scmp.lt.s32.totalorder %s975_s4, %s747_s29 }
  0x28   : > { %p744_p6 = pnand %p742_p3, %p728_p5  ;;  %p750_p4 = scmp.lt.s32.totalorder %s748_s3, %s741_s20 }
  0x2a   : > { %p745_p11 = pneg %p744_p6  ;;  %p751_p10 = por %p750_p4, %p749_p9 }
  0x2c   : > { %p752_p12 = pnand %p751_p10, %p745_p11 }
  0x2e   : > { %755 = shalt.err (!%p752_p12)
}
  0x2f   : > { %662 = dma.hbm_to_vmem [thread:$0]  (!%p979_p0), %s971_s30, 128, %s975_s4, %s134_s6  }
  0x30   : > { %p1162_p1 = scmp.lt.s32.totalorder %s872_s14, 3  ;;  %p1163_p2 = scmp.ge.s32.totalorder %s872_s14, 1 }
  0x31   : > { %s1024_s16 = scalar_lea.hbm %s1153_s1, %s536_s27  ;;  %s156_s18 = scalar_lea.vmem [#allocation8], %s535_s26 }
  0x32   : > { %p1015_p7 = pnand %p1163_p2, %p1162_p1  ;;  %s164_s19 = sshll.u32 %s156_s18, 4  ;;  %s165_s19 = int_to_ptr.vmem [resolvable:$true] %s164_s19 }
  0x33   : > { %s153_s30 = scalar_lea.sflag [#allocation9], %s962_s25  ;;  %s756_s4 = scalar_lea.hbm %s1024_s16, 128 }
  0x34   : > { %s1164_s7 = scalar_select %p1015_p7, 1, 0 }
  0x35   : > { %p757_p9 = scmp.ne.s32.totalorder %s1024_s16, %s756_s4  ;;  %s761_s27 = scalar_lea.hbm %s1153_s1, 256 }
  0x36   : > { %p762_p3 = scmp.lt.u32.totalorder %s1024_s16, %s1153_s1  ;;  %p763_p6 = scmp.lt.u32.totalorder %s761_s27, %s756_s4 }
  0x37   : > { %p759_p11 = pnand %p757_p9, %p728_p5  ;;  %p765_p10 = scmp.lt.u32.totalorder %s756_s4, %s1024_s16 }
  0x38   : > { %p764_p4 = por %p763_p6, %p762_p3 }
  0x39   : > { %p760_p13 = pneg %p759_p11 }
  0x3a   : > { %p766_p12 = por %p765_p10, %p764_p4 }
  0x3c   : > { %p767_p1 = pnand %p766_p12, %p760_p13 }
  0x3e   : > { %770 = shalt.err (!%p767_p1)
}
  0x3f   : > { %s771_s25 = scalar_lea.vmem %s165_s19, 128  ;;  %s875_s26 = smov [#allocation8]  }
  0x40   : > { %p772_p2 = scmp.ne.s32.totalorder %s165_s19, %s771_s25  ;;  %s776_s3 = sshll.u32 %s875_s26, 4  ;;  %s777_s3 = int_to_ptr.vmem [resolvable:$false] %s776_s3 }
  0x41   : > { %s778_s8 = scalar_lea.vmem %s777_s3, 256  ;;  %p779_p8 = scmp.lt.s32.totalorder %s165_s19, %s777_s3 }
  0x42   : > { %p774_p9 = pnand %p772_p2, %p728_p5  ;;  %p780_p7 = scmp.lt.s32.totalorder %s778_s8, %s771_s25 }
  0x44   : > { %p775_p11 = pneg %p774_p9  ;;  %p781_p3 = por %p780_p7, %p779_p8 }
  0x46   : > { %p782_p6 = pnand %p781_p3, %p775_p11 }
  0x48   : > { %785 = shalt.err (!%p782_p6)
}
  0x49   : > { %665 = dma.hbm_to_vmem [thread:$0]  (!%p979_p0), %s1024_s16, 128, %s165_s19, %s153_s30  }
  0x4a   : > { %p1165_p13 = scmp.ne.s32.totalorder %s1164_s7, 0 }
  0x4b   : > { %s1051_s15 = sand.u32 (!%p1165_p13), 1, %s856_s10   ;;  %p1166_p8 = scmp.ne.s32.totalorder (!%p1165_p13), %s1158_s21, 0 }
  0x4c   : > { %173 = sbr.rel (%p1165_p13) target bundleno = 375 (0x177), region = 28  ;;  %s540_s18 = sshll.u32 (!%p1165_p13), %s1051_s15, 3 }
  0x4d   : > { %s176_s4 = scalar_lea.sflag (!%p1165_p13), [#allocation6], %s1051_s15  ;;  %s1055_s6 = scalar_lea.vmem (!%p1165_p13), [#allocation5], %s540_s18 }
  0x53   : > { %839 = dma.done.wait (%p1166_p8), %s176_s4, 128  }
  0x54   : > { %841 = vsyncadd (%p1166_p8), %s176_s4, 4294967168  ;;  %s185_s5 = scalar_lea.sflag [#allocation9], %s1051_s15  ;;  %s1062_s7 = scalar_lea.vmem [#allocation8], %s540_s18  ;;  %v220_v0 = vlaneseq }
  0x55   : > { %843 = dma.done.wait (%p1166_p8), %s185_s5, 128  }
  0x56   : > { %845 = vsyncadd (%p1166_p8), %s185_s5, 4294967168  ;;  %vm217_vm0 = vcmask 7168   ;;  %v876_v1 = vmov 0.0|0.0   ;;  %v221_v2 = vshrl.u32 %v220_v0, 7  ;;  %v1069_v3 = vand.u32 127, %v220_v0  ;;  %v303_v23 = vld [vmem:[%s1055_s6] sm:$0xff] }
  0x57   : > { %629 = vmatprep.subr.bf16.mxu0 %v876_v1  ;;  %v877_v4 = vmov 0.0   ;;  %vm878_vm1 = vmmov 0   ;;  %v879_v5 = vmov 0   ;;  %v880_v11 = vmov 1.0|1.0   ;;  %v304_v24 = vld [vmem:[%s1062_s7] sm:$0xff] }
  0x58   : > { %218 = vst.msk [vmem:[#allocation3] sm:$0xff] %vm217_vm0, %v877_v4  ;;  %219 = vst [vmem:[#allocation4] sm:$0x1] %v877_v4  ;;  %626 = vmatprep.mubr.msk.f32.mxu0 %vm878_vm1, %v877_v4  ;;  %725 = vset.pattern.permute.xlu0 %v879_v5  ;;  %v222_v6 = vadd.s32 8, %v221_v2  ;;  %vm239_vm2 = vcmp.le.s32.totalorder %v221_v2, %v1069_v3  ;;  %v223_v7 = vadd.s32 16, %v221_v2  ;;  %v224_v8 = vadd.s32 24, %v221_v2 }
  0x59   : > { %v225_v9 = vadd.s32 32, %v221_v2  ;;  %v226_v10 = vadd.s32 40, %v221_v2  ;;  %v227_v13 = vadd.s32 48, %v221_v2  ;;  %v228_v14 = vadd.s32 56, %v221_v2  ;;  %s558_s21 = sshll.u32 %s864_s12, 4  ;;  %s212_s16 = scalar_lea.vmem [#allocation10], %s1051_s15 }
  0x5a   : > { %vm240_vm3 = vcmp.le.s32.totalorder %v222_v6, %v1069_v3  ;;  %vm241_vm4 = vcmp.le.s32.totalorder %v223_v7, %v1069_v3  ;;  %vm242_vm5 = vcmp.le.s32.totalorder %v224_v8, %v1069_v3  ;;  %v229_v15 = vadd.s32 64, %v221_v2  ;;  %s432_s19 = sshll.u32 %s212_s16, 4  ;;  %s1103_s27 = scalar_lea.hbm %s1154_s2, %s558_s21  ;;  %s1105_s19 = int_to_ptr.vmem [resolvable:$true] %s432_s19 }
  0x5b   : > { %vm630_vm6 = vmpackc.low %vm240_vm3, %vm239_vm2  ;;  %vm243_vm8 = vcmp.le.s32.totalorder %v225_v9, %v1069_v3  ;;  %vm244_vm9 = vcmp.le.s32.totalorder %v226_v10, %v1069_v3  ;;  %vm245_vm11 = vcmp.le.s32.totalorder %v227_v13, %v1069_v3  ;;  %vm246_vm12 = vcmp.le.s32.totalorder %v228_v14, %v1069_v3  ;;  %s420_s28 = scalar_lea.sflag [#allocation7], %s1051_s15  ;;  %s786_s29 = scalar_lea.vmem %s1105_s19, 16 }
  0x5c   : > { %631 = vmatpush3.bf16.msk.msra.mxu0 %vm630_vm6, %v880_v11  ;;  %vm633_vm7 = vmpackc.low %vm242_vm5, %vm241_vm4  ;;  %v230_v16 = vadd.s32 72, %v221_v2  ;;  %vm247_vm14 = vcmp.le.s32.totalorder %v229_v15, %v1069_v3  ;;  %v231_v17 = vadd.s32 80, %v221_v2  ;;  %v232_v18 = vadd.s32 88, %v221_v2  ;;  %p787_p0 = scmp.ne.s32.totalorder %s1105_s19, %s786_s29  ;;  %p1167_p5 = scmp.ne.s32.totalorder %s1159_s22, 0 }
  0x5d   : > { %632 = vmatprep.subr.bf16.mxu0 %v876_v1  ;;  %vm636_vm10 = vmpackc.low %vm244_vm9, %vm243_vm8  ;;  %v233_v19 = vadd.s32 96, %v221_v2  ;;  %v234_v20 = vadd.s32 104, %v221_v2  ;;  %v235_v21 = vadd.s32 112, %v221_v2  ;;  %v236_v22 = vadd.s32 120, %v221_v2  ;;  %s881_s12 = smov [#allocation10]  }
  0x5e   : > { %vm639_vm13 = vmpackc.low %vm246_vm12, %vm245_vm11  ;;  %vm248_vm15 = vcmp.le.s32.totalorder %v230_v16, %v1069_v3  ;;  %vm249_vm2 = vcmp.le.s32.totalorder %v231_v17, %v1069_v3  ;;  %vm250_vm3 = vcmp.le.s32.totalorder %v232_v18, %v1069_v3  ;;  %v305_v25 = vsub.f32 %v303_v23, %v304_v24  ;;  %p788_p7 = pnand %p787_p0, %p1167_p5  ;;  %s790_s25 = sshll.u32 %s881_s12, 4  ;;  %s791_s25 = int_to_ptr.vmem [resolvable:$false] %s790_s25 }
  0x5f   : > { %v322_v12 = vld [vmem:[#allocation3] sm:$0xff]  ;;  %vm642_vm1 = vmpackc.low %vm248_vm15, %vm247_vm14  ;;  %vm251_vm5 = vcmp.le.s32.totalorder %v233_v19, %v1069_v3  ;;  %vm252_vm6 = vcmp.le.s32.totalorder %v234_v20, %v1069_v3  ;;  %vm253_vm8 = vcmp.le.s32.totalorder %v235_v21, %v1069_v3  ;;  %vm254_vm9 = vcmp.le.s32.totalorder %v236_v22, %v1069_v3  ;;  %v399_v38 = vld [vmem:[#allocation4] sm:$0x1]  ;;  %s792_s26 = scalar_lea.vmem %s791_s25, 32  ;;  %p793_p10 = scmp.lt.s32.totalorder %s1105_s19, %s791_s25 }
  0x60   : > { %325 = vperm.xlu0 %725, %v322_v12   ;;  %634 = vmatpush3.bf16.msk.msra.mxu0 %vm633_vm7, %v880_v11  ;;  %vm645_vm4 = vmpackc.low %vm250_vm3, %vm249_vm2  ;;  %p789_p4 = pneg %p788_p7  ;;  %p794_p12 = scmp.lt.s32.totalorder %s792_s26, %s786_s29 }
  0x61   : > { %635 = vmatprep.subr.bf16.mxu0 %v876_v1  ;;  %vm648_vm7 = vmpackc.low %vm252_vm6, %vm251_vm5 }
  0x62   : > { %p795_p1 = por %p794_p12, %p793_p10 }
  0x64   : > { %637 = vmatpush3.bf16.msk.msra.mxu0 %vm636_vm10, %v880_v11  ;;  %vm651_vm10 = vmpackc.low %vm254_vm9, %vm253_vm8  ;;  %p796_p2 = pnand %p795_p1, %p789_p4 }
  0x65   : > { %638 = vmatprep.subr.bf16.mxu0 %v876_v1 }
  0x68   : > { %640 = vmatpush3.bf16.msk.msra.mxu0 %vm639_vm13, %v880_v11 }
  0x69   : > { %641 = vmatprep.subr.bf16.mxu0 %v876_v1 }
  0x6c   : > { %643 = vmatpush3.bf16.msk.msra.mxu0 %vm642_vm1, %v880_v11 }
  0x6d   : > { %644 = vmatprep.subr.bf16.mxu0 %v876_v1 }
  0x70   : > { %646 = vmatpush3.bf16.msk.msra.mxu0 %vm645_vm4, %v880_v11 }
  0x71   : > { %647 = vmatprep.subr.bf16.mxu0 %v876_v1 }
  0x74   : > { %649 = vmatpush3.bf16.msk.msra.mxu0 %vm648_vm7, %v880_v11 }
  0x75   : > { %650 = vmatprep.subr.bf16.mxu0 %v876_v1 }
  0x78   : > { %652 = vmatpush3.bf16.msk.msra.mxu0 %vm651_vm10, %v880_v11 }
  0x7b   : > { %627 = vmatmul.mubr.f32.vlgmr.msra.gmra.mrb[0].mxu0 %v305_v25 }
  0x7f   : > { %409 = vadd.xlane.f32.xlu0 %v305_v25 }
  0xdf   : > { %v326_v26 = vpop.permute.xlu0 %325 }
 0x10c   : > { %v410_v27 = vpop.xlane.xlu0 %409 }
 0x10d   : > { %v411_v28 = vadd.f32 %v410_v27, %v322_v12 }
 0x10f   : > { %413 = vst.msk [vmem:[#allocation3] sm:$0xff] %vm217_vm0, %v411_v28 }
 0x14e   : > { %v394_v29 = vpop.f32.mrb[0].mxu0 }
 0x14f   : > { %v395_v30 = vadd.f32 %v394_v29, %v326_v26  ;;  %v628_v31 = vpop.f32.mrb[1].mxu0 }
 0x151   : > { %v398_v32 = vmul.f32 %v395_v30, %v395_v30 }
 0x153   : > { %v400_v33 = vrot.slane %v398_v32, 4 }
 0x155   : > { %v401_v34 = vadd.f32 %v400_v33, %v398_v32 }
 0x157   : > { %v402_v35 = vrot.slane %v401_v34, 2 }
 0x159   : > { %v403_v36 = vadd.f32 %v402_v35, %v401_v34 }
 0x15b   : > { %v404_v37 = vrot.slane %v403_v36, 1 }
 0x15d   : > { %v405_v39 = vadd.f32 %v404_v37, %v403_v36 }
 0x15f   : > { %v406_v40 = vadd.f32 %v405_v39, %v399_v38 }
 0x161   : > { %407 = vst [vmem:[#allocation4] sm:$0x1] %v406_v40 }
 0x168   : > { %v417_v41 = vld [vmem:[#allocation4] sm:$0x1] }
 0x169   : > { %418 = vst [vmem:[%s212_s16] sm:$0x1] %v417_v41 }
 0x16a   : > { %799 = shalt.err (!%p796_p2)
}
 0x16b   : > { %s800_s3 = scalar_lea.hbm %s1103_s27, 16  ;;  %s804_s18 = scalar_lea.hbm %s1154_s2, 32 }
 0x16c   : > { %p801_p9 = scmp.ne.s32.totalorder %s1103_s27, %s800_s3  ;;  %p805_p6 = scmp.lt.u32.totalorder %s1103_s27, %s1154_s2 }
 0x16d   : > { %p806_p13 = scmp.lt.u32.totalorder %s804_s18, %s800_s3  ;;  %p808_p0 = scmp.lt.u32.totalorder %s800_s3, %s1103_s27 }
 0x16e   : > { %p802_p11 = pnand %p801_p9, %p1167_p5 }
 0x16f   : > { %p807_p8 = por %p806_p13, %p805_p6 }
 0x170   : > { %p803_p3 = pneg %p802_p11 }
 0x171   : > { %p809_p7 = por %p808_p0, %p807_p8 }
 0x173   : > { %p810_p4 = pnand %p809_p7, %p803_p3 }
 0x175   : > { %813 = shalt.err (!%p810_p4)
}
 0x176   : > { %657 = dma.vmem_to_hbm [thread:$0]  (%p1167_p5), %s1105_s19, 16, %s1103_s27, %s420_s28  }
 0x177 PF: > { %s444_s5 = sand.u32 1, %s852_s9   ;;  %p1168_p10 = scmp.ne.s32.totalorder %s1160_s24, 0 }
 0x178   : > { %p1169_p12 = scmp.ge.s32.totalorder %s872_s14, 2  ;;  %s445_s7 = scalar_lea.sflag [#allocation7], %s444_s5 }
 0x17a   : > { %p667_p1 = pnand %p1169_p12, %p1168_p10 }
 0x17c   : > { %847 = dma.done.wait (!%p667_p1), %s445_s7, 16  }
 0x17d   : > { %849 = vsyncadd (!%p667_p1), %s445_s7, 4294967280  ;;  %s21_s14 = sadd.s32 1, %s872_s14   ;;  %s1170_s9 = smov %s856_s10 }
 0x17e   : > { %p18_p2 = scmp.ge.s32.totalorder %s21_s14, 4   ;;  %s1171_s10 = smov %s860_s11 }
 0x17f   : > { %s1172_s11 = smov %s953_s23  ;;  %s1173_s12 = smov %s868_s13 }
 0x180   : > { %s1174_s13 = smov %s1176_s17  ;;  %20 = sbr.rel (!%p18_p2) target bundleno = 8 (0x8), region = 94 }
 0x187   :  { %449 = vsyncpa [#allocation6], 1 }
 0x188   :  { %451 = vsyncpa [#allocation6 + $0x1], 1 }
 0x189   :  { %452 = vsyncpa [#allocation9], 1 }
 0x18a   :  { %454 = vsyncpa [#allocation9 + $0x1], 1 }
 0x18b   :  { %455 = vsyncpa [#allocation7], 1 }
 0x18c   :  { %457 = vsyncpa [#allocation7 + $0x1], 1 }

</bundles_post_ra>
